<compile_context>
chip_gen: v5e
topology: v5e:2x2
jax: 0.10.0
libtpu: 0.0.40
codegen_flags: <defaults>
</compile_context>

<pallas_src>
import jax
import jax.numpy as jnp
from jax import lax
from jax.experimental import pallas as pl
from jax.experimental.pallas import tpu as pltpu


def _round_up(a: int, b: int) -> int:
    return ((a + b - 1) // b) * b


def _make_classifier_kernel(temp: float, eps: float = 1e-12):
    inv_temp = 1.0 / float(temp)
    eps_sq = float(eps) * float(eps)  # 1e-24: a normal f32

    def kernel(x_ref, w_ref, ot_ref):
        # x_ref : (TN, D) tile of input features
        # w_ref : (C, D)  full classifier weight (nn.Linear layout), VMEM resident
        # ot_ref: (C, TN) transposed logits tile (lane-dense along TN)
        x = x_ref[...]
        xf = x.astype(jnp.float32)

        # F.normalize(x, dim=1, eps=1e-12) == x * rsqrt(max(||x||^2, eps^2)).
        # The matmul is linear, so the per-row scale (with 1/temp folded in) is
        # applied to the small (C, TN) logits after the matmul instead of to
        # the (TN, D) features -> ~D/C fewer VALU mults, no scaled-x copy.
        sq = jnp.sum(xf * xf, axis=-1)                            # (TN,)
        scale = lax.rsqrt(jnp.maximum(sq, eps_sq)) * inv_temp     # EUP rsqrt

        # bf16 MXU path when both operands are bf16 (wrapper aligns dtypes).
        if x_ref.dtype == jnp.bfloat16 and w_ref.dtype == jnp.bfloat16:
            lhs, rhs = w_ref[...], x
        else:
            lhs, rhs = w_ref[...].astype(jnp.float32), xf

        # Contract D with D -> (C, TN): the weight is consumed in its native
        # nn.Linear layout, no transpose / relayout of the weight tile.
        logits_t = lax.dot_general(
            lhs, rhs,
            dimension_numbers=(((1,), (1,)), ((), ())),
            preferred_element_type=jnp.float32,
        )
        ot_ref[...] = (logits_t * scale[None, :]).astype(ot_ref.dtype)

    return kernel


def _vmem_budget_bytes() -> int:
    """Generation-aware VMEM budget (v7x: 64 MiB/TC, v5e/v6e: 128 MiB)."""
    cap = 128 * 1024 * 1024
    try:
        info = pltpu.get_tpu_info()
        cap = int(getattr(info, "vmem_capacity_bytes", cap))
    except Exception:
        pass
    # Leave headroom for compiler scratch / semaphores; never ask for > 96 MiB.
    return min(int(cap * 0.70), 96 * 1024 * 1024)


def _pick_row_tile(N, D, C, x_itemsize, o_itemsize, budget_bytes,
                   target_x_bytes=8 * 1024 * 1024):
    """Pick a multiple-of-128 row tile: ~4-8 MiB of x per grid step, fits the
    VMEM budget with 2-deep buffering, prefers an even number (>=2) of steps
    (v7x megacore sharding) and bounded zero-padding waste."""
    n128 = _round_up(max(N, 1), 128)
    cands = [t for t in (8192, 4096, 2048, 1024, 512, 256, 128) if t <= n128]
    if not cands:
        cands = [128]

    def fits(t):
        f32_tile = t * D * 4
        need = (2 * t * D * x_itemsize        # double-buffered x tiles
                + 2 * C * t * o_itemsize      # double-buffered out tiles
                + 2 * C * D * x_itemsize      # resident weight buffers
                + 2 * f32_tile)               # in-kernel f32 intermediates
        return need <= budget_bytes

    def steps(t):
        return -(-N // t)                     # cdiv; padding rounds N up to t

    fitting = [t for t in cands if fits(t)]
    if not fitting:
        return 128
    max_waste = max(127, N // 8)

    def ok_waste(t):
        return steps(t) * t - N <= max_waste

    # Preference cascade, progressively relaxed.
    for t in fitting:
        if (t * D * x_itemsize <= target_x_bytes and steps(t) >= 2
                and steps(t) % 2 == 0 and ok_waste(t)):
            return t
    for t in fitting:
        if t * D * x_itemsize <= target_x_bytes and steps(t) >= 2 and ok_waste(t):
            return t
    for t in fitting:
        if t * D * x_itemsize <= target_x_bytes and ok_waste(t):
            return t
    for t in fitting:
        if t * D * x_itemsize <= target_x_bytes:
            return t
    return fitting[-1]


def res_classifier_mme_forward(x, weight, temp=0.05, row_tile=None):
    """Pallas implementation of ResClassifier_MME.forward(x).

    x:      (N, D) features
    weight: (C, D) fc weight (nn.Linear layout)
    returns (N, C) logits in x.dtype
    """
    N, D = x.shape
    C, D_w = weight.shape
    assert D == D_w, "feature dim mismatch"
    out_dtype = x.dtype

    # Align the weight dtype with x so the bf16 MXU path triggers when x is
    # bf16 (and stays f32-accurate when x is f32).
    if weight.dtype != x.dtype:
        weight = weight.astype(x.dtype)

    budget = _vmem_budget_bytes()
    if row_tile is None:
        row_tile = _pick_row_tile(N, D, C,
                                  jnp.dtype(x.dtype).itemsize,
                                  jnp.dtype(out_dtype).itemsize,
                                  budget)

    # Zero-pad the batch to a multiple of the row tile (padded rows produce
    # exactly-zero logits and are sliced off below).  This keeps the streamed,
    # lane-dense output path for arbitrary batch sizes.
    n_pad = _round_up(N, row_tile)
    if n_pad != N:
        x = jnp.pad(x, ((0, n_pad - N), (0, 0)))
    num_steps = n_pad // row_tile

    kernel = _make_classifier_kernel(temp)

    out_t = pl.pallas_call(
        kernel,
        out_shape=jax.ShapeDtypeStruct((C, n_pad), out_dtype),
        grid_spec=pltpu.PrefetchScalarGridSpec(
            num_scalar_prefetch=0,
            grid=(num_steps,),
            in_specs=[
                pl.BlockSpec((row_tile, D), lambda i: (i, 0)),  # streamed x tiles
                pl.BlockSpec((C, D), lambda i: (0, 0)),         # weight resident in VMEM
            ],
            out_specs=pl.BlockSpec((C, row_tile), lambda i: (0, i)),
        ),
        compiler_params=pltpu.CompilerParams(
            dimension_semantics=("parallel",),
            vmem_limit_bytes=int(budget),
        ),
    )(x, weight)

    # Layout plumbing only: drop padded rows and return PyTorch's (N, C).
    # TODO(synk): if the consumer can accept (C, N) logits, skip this transpose.
    return out_t[:, :N].T


def _reference_forward(x, weight, temp=0.05, eps=1e-12):
    xf = x.astype(jnp.float32)
    wf = weight.astype(jnp.float32)
    norm = jnp.sqrt(jnp.sum(xf * xf, axis=1, keepdims=True))
    xn = xf / jnp.maximum(norm, eps)
    return (xn @ wf.T) / temp


if __name__ == "__main__":
    temp = 0.05
    key = jax.random.PRNGKey(0)
    ks = jax.random.split(key, 6)

    # Case 1: small shape consistent with the module (batch=8, D=256, C=12).
    N1, D1, C1 = 8, 256, 12
    x1 = jax.random.normal(ks[0], (N1, D1), dtype=jnp.float32)
    w1 = 0.1 * jax.random.normal(ks[1], (C1, D1), dtype=jnp.float32)  # weights_init
    out1 = jax.block_until_ready(res_classifier_mme_forward(x1, w1, temp=temp))
    ref1 = _reference_forward(x1, w1, temp=temp)
    assert out1.shape == (N1, C1)
    assert jnp.allclose(out1, ref1, atol=5e-3, rtol=5e-3), "mismatch (case 1)"

    # Case 2: batch not a multiple of 128 -> exercises the padded, tiled path.
    N2, D2, C2 = 300, 256, 12
    x2 = jax.random.normal(ks[2], (N2, D2), dtype=jnp.float32)
    w2 = 0.1 * jax.random.normal(ks[3], (C2, D2), dtype=jnp.float32)
    out2 = jax.block_until_ready(res_classifier_mme_forward(x2, w2, temp=temp))
    ref2 = _reference_forward(x2, w2, temp=temp)
    assert out2.shape == (N2, C2)
    assert jnp.allclose(out2, ref2, atol=5e-3, rtol=5e-3), "mismatch (case 2)"

    # Case 3: bf16 features + f32 weight -> wrapper aligns dtypes (bf16 MXU
    # path), even multi-step grid.
    N3, D3, C3 = 512, 256, 12
    x3 = jax.random.normal(ks[4], (N3, D3), dtype=jnp.bfloat16)
    w3 = 0.1 * jax.random.normal(ks[5], (C3, D3), dtype=jnp.float32)
    out3 = jax.block_until_ready(res_classifier_mme_forward(x3, w3, temp=temp))
    ref3 = _reference_forward(x3, w3, temp=temp)
    assert out3.shape == (N3, C3)
    rel = jnp.max(jnp.abs(out3.astype(jnp.float32) - ref3)) / (jnp.max(jnp.abs(ref3)) + 1e-6)
    assert rel < 3e-2, "mismatch (case 3, bf16)"

    print("KERNEL_OK")
</pallas_src>

<mosaic_0001>
module attributes {stable_mosaic.version = 11 : i64} {
  func.func @kernel(%arg0: i32, %arg1: memref<128x256xf32, #tpu.memory_space<vmem>>, %arg2: memref<12x256xf32, #tpu.memory_space<vmem>>, %arg3: memref<12x128xf32, #tpu.memory_space<vmem>>) attributes {dimension_semantics = [#tpu.dimension_semantics<parallel>], iteration_bounds = array<i64: 1>, scalar_prefetch = 0 : i64, scratch_operands = 0 : i64, tpu.core_type = #tpu.core_type<tc>, window_params = [{transform_indices = @transform_0, window_bounds = array<i64: 128, 256>}, {pipeline_mode = #tpu.pipeline_mode<synchronous>, transform_indices = @transform_1, window_bounds = array<i64: 12, 256>}, {transform_indices = @transform_2, window_bounds = array<i64: 12, 128>}]} {
    %c0 = arith.constant 0 : index
    %c0_0 = arith.constant 0 : index
    %0 = vector.load %arg1[%c0, %c0_0] : memref<128x256xf32, #tpu.memory_space<vmem>>, vector<128x256xf32>
    %1 = arith.mulf %0, %0 : vector<128x256xf32>
    %cst = arith.constant dense<0.000000e+00> : vector<128xf32>
    %2 = vector.multi_reduction <add>, %1, %cst [1] : vector<128x256xf32> to vector<128xf32>
    %cst_1 = arith.constant 1.000000e-24 : f32
    %3 = vector.broadcast %cst_1 : f32 to vector<128xf32>
    %4 = arith.maximumf %2, %3 : vector<128xf32>
    %5 = math.rsqrt %4 : vector<128xf32>
    %cst_2 = arith.constant 2.000000e+01 : f32
    %6 = vector.broadcast %cst_2 : f32 to vector<128xf32>
    %7 = arith.mulf %5, %6 : vector<128xf32>
    %c0_3 = arith.constant 0 : index
    %c0_4 = arith.constant 0 : index
    %8 = vector.load %arg2[%c0_3, %c0_4] : memref<12x256xf32, #tpu.memory_space<vmem>>, vector<12x256xf32>
    %cst_5 = arith.constant dense<0.000000e+00> : vector<12x128xf32>
    %9 = tpu.matmul %8, %0, %cst_5 {dimension_numbers = #tpu.dot_dimension_numbers<[1], [1], [0], [0], [0, 0, 1, 0], [], []>} : vector<12x256xf32>, vector<128x256xf32>, vector<12x128xf32> -> vector<12x128xf32>
    %10 = vector.shape_cast %7 : vector<128xf32> to vector<1x128xf32>
    %11 = vector.broadcast %10 : vector<1x128xf32> to vector<12x128xf32>
    %12 = arith.mulf %9, %11 : vector<12x128xf32>
    %c0_6 = arith.constant 0 : index
    %c0_7 = arith.constant 0 : index
    %13 = vector.load %arg3[%c0_6, %c0_7] : memref<12x128xf32, #tpu.memory_space<vmem>>, vector<12x128xf32>
    tpu.vector_store %arg3[%c0_6, %c0_7], %12 {strides = array<i32>} : memref<12x128xf32, #tpu.memory_space<vmem>>, vector<12x128xf32>,
    return
  }
  func.func @transform_0(%arg0: i32) -> (i32, i32) {
    %c0_i32 = arith.constant 0 : i32
    %c0_i32_0 = arith.constant 0 : i32
    return %arg0, %c0_i32 : i32, i32
  }
  func.func @transform_1(%arg0: i32) -> (i32, i32) {
    %c0_i32 = arith.constant 0 : i32
    %c0_i32_0 = arith.constant 0 : i32
    %c0_i32_1 = arith.constant 0 : i32
    return %c0_i32, %c0_i32_0 : i32, i32
  }
  func.func @transform_2(%arg0: i32) -> (i32, i32) {
    %c0_i32 = arith.constant 0 : i32
    %c0_i32_0 = arith.constant 0 : i32
    return %c0_i32, %arg0 : i32, i32
  }
}

</mosaic_0001>

<bundles_post_ra>
// kernel: tpu_custom_call.1
= control target key start
LH: loop header
LB: loop body
LE: loop exit
PB: predicated region body
PF: predicated region fallthrough
CT: control target
= control target key end

     0   :  { %7 = vsyncpa [#allocation3], 0  ;;  %s1165_s0 = inlined_call_operand.hbm [shape: f32[128,256], index: 0, kind: input, shape index: {}]   ;;  %s1166_s1 = inlined_call_operand.hbm [shape: f32[12,256], index: 1, kind: input, shape index: {}]   ;;  %s1167_s2 = inlined_call_operand.hbm [shape: f32[12,128], index: 2, kind: output, shape index: {}]  }
   0x1   :  { %8 = vsyncpa [#allocation6], 0 }
   0x2   :  { %9 = vsyncpa [#allocation4], 0  ;;  %s14_s11 = sshll.u32 %s1165_s0, 4  ;;  %s664_s12 = smov [#allocation2]   ;;  %s15_s11 = int_to_ptr.hbm [resolvable:$true] %s14_s11 }
   0x3   :  { %s16_s13 = sshll.u32 %s664_s12, 4  ;;  %s27_s16 = sshll.u32 %s1166_s1, 4  ;;  %s17_s13 = int_to_ptr.vmem [resolvable:$true] %s16_s13  ;;  %s28_s16 = int_to_ptr.hbm [resolvable:$true] %s27_s16 }
   0x4   :  { %s665_s17 = smov 256   ;;  %s666_s18 = smov 16  }
   0x5   :  { %22 = dma.hbm_to_vmem [thread:$0]  %s15_s11, 4096, %s17_s13, [#allocation3], %s665_s17, %s665_s17, %s666_s18  }
   0x6   :  { %s667_s19 = smov [#allocation5]  }
   0x7   :  { %s29_s20 = sshll.u32 %s667_s19, 4  ;;  %s30_s20 = int_to_ptr.vmem [resolvable:$true] %s29_s20 }
   0x8   :  { %35 = dma.hbm_to_vmem [thread:$0]  %s28_s16, 512, %s30_s20, [#allocation6], %s665_s17, %s665_s17, %s666_s18  }
   0x9   :  { %658 = dma.done.wait [#allocation3], 4096  }
   0xa   :  { %659 = vsyncadd [#allocation3], 4294963200 }
   0xb   :  { %660 = dma.done.wait [#allocation6], 512  }
   0xc   :  { %661 = vsyncadd [#allocation6], 4294966784  ;;  %v692_v0 = vld [vmem:[#allocation2 + $0xf0] sm:$0xff]  ;;  %v694_v1 = vld [vmem:[#allocation2 + $0xf8] sm:$0xff]  ;;  %vm419_vm12 = vcmask 130112   ;;  %s668_s0 = smov [#allocation7]  }
   0xd   :  { %352 = vmatpush.xpose.msra.mxu0 %v692_v0  ;;  %515 = vmatpush.xpose.msra.mxu2 %v692_v0  ;;  %v698_v2 = vld [vmem:[#allocation2 + $0xe0] sm:$0xff]  ;;  %v702_v4 = vld [vmem:[#allocation2 + $0x8] sm:$0xff]  ;;  %v728_v17 = vld [vmem:[#allocation2 + $0x10] sm:$0xff]  ;;  %s499_s1 = sshll.u32 %s668_s0, 4  ;;  %s501_s23 = sshll.u32 %s1167_s2, 4  ;;  %s500_s1 = int_to_ptr.vmem [resolvable:$true] %s499_s1  ;;  %s502_s23 = int_to_ptr.hbm [resolvable:$true] %s501_s23 }
   0xe   :  { %v700_v3 = vld [vmem:[#allocation2] sm:$0xff]  ;;  %375 = vmatpush.xpose.msra.mxu1 %v694_v1  ;;  %531 = vmatpush.xpose.msra.mxu3 %v694_v1  ;;  %v77_v6 = vmul.f32 %v702_v4, %v702_v4  ;;  %v712_v8 = vld [vmem:[#allocation2 + $0x28] sm:$0xff]  ;;  %v732_v19 = vld [vmem:[#allocation2 + $0x18] sm:$0xff]  ;;  %v78_v24 = vmul.f32 %v728_v17, %v728_v17  ;;  %s669_s24 = smov 128   ;;  %s670_s25 = smov 8  }
   0xf   :  { %v76_v5 = vmul.f32 %v700_v3, %v700_v3  ;;  %v710_v7 = vld [vmem:[#allocation2 + $0x20] sm:$0xff]  ;;  %v716_v10 = vld [vmem:[#allocation2 + $0xe8] sm:$0xff]  ;;  %v81_v12 = vmul.f32 %v712_v8, %v712_v8  ;;  %v734_v20 = vld [vmem:[#allocation2 + $0x30] sm:$0xff]  ;;  %v79_v28 = vmul.f32 %v732_v19, %v732_v19 }
  0x10   :  { %v714_v9 = vld [vmem:[#allocation2 + $0x40] sm:$0xff]  ;;  %v80_v11 = vmul.f32 %v710_v7, %v710_v7  ;;  %v722_v13 = vld [vmem:[#allocation2 + $0x48] sm:$0xff]  ;;  %v736_v21 = vld [vmem:[#allocation2 + $0x38] sm:$0xff]  ;;  %v82_v29 = vmul.f32 %v734_v20, %v734_v20 }
  0x11   :  { %v84_v14 = vmul.f32 %v714_v9, %v714_v9  ;;  %v108_v15 = vadd.f32 %v77_v6, %v76_v5  ;;  %v85_v16 = vmul.f32 %v722_v13, %v722_v13  ;;  %353 = vmatpush.xpose.msra.mxu0 %v698_v2  ;;  %516 = vmatpush.xpose.msra.mxu2 %v698_v2  ;;  %v740_v23 = vld [vmem:[#allocation2 + $0xd0] sm:$0xff]  ;;  %v746_v26 = vld [vmem:[#allocation2 + $0x58] sm:$0xff]  ;;  %v764_v33 = vld [vmem:[#allocation2 + $0xc0] sm:$0xff] }
  0x12   :  { %v114_v18 = vadd.f32 %v81_v12, %v80_v11  ;;  %376 = vmatpush.xpose.msra.mxu1 %v716_v10  ;;  %532 = vmatpush.xpose.msra.mxu3 %v716_v10  ;;  %v744_v25 = vld [vmem:[#allocation2 + $0x50] sm:$0xff]  ;;  %v748_v27 = vld [vmem:[#allocation2 + $0xd8] sm:$0xff]  ;;  %v83_v30 = vmul.f32 %v736_v21, %v736_v21  ;;  %v87_v32 = vmul.f32 %v746_v26, %v746_v26  ;;  %v766_v34 = vld [vmem:[#allocation2 + $0xc8] sm:$0xff] }
  0x13   :  { %v120_v22 = vadd.f32 %v85_v16, %v84_v14  ;;  %109 = vadd.xlane.f32.xlu0 %v108_v15  ;;  %v86_v31 = vmul.f32 %v744_v25, %v744_v25  ;;  %v111_v35 = vadd.f32 %v79_v28, %v78_v24  ;;  %v768_v37 = vld [vmem:[#allocation2 + $0x60] sm:$0xff]  ;;  %v770_v39 = vld [vmem:[#allocation2 + $0x68] sm:$0xff]  ;;  %v772_v40 = vld [vmem:[#allocation2 + $0x70] sm:$0xff]  ;;  %v102_v14 = vmul.f32 %v740_v23, %v740_v23 }
  0x14   :  { %115 = vadd.xlane.f32.xlu1 %v114_v18  ;;  %v117_v36 = vadd.f32 %v83_v30, %v82_v29  ;;  %v774_v41 = vld [vmem:[#allocation2 + $0x78] sm:$0xff]  ;;  %v60_v42 = vld [vmem:[#allocation2 + $0x80] sm:$0xff]  ;;  %v61_v43 = vld [vmem:[#allocation2 + $0x88] sm:$0xff]  ;;  %v88_v45 = vmul.f32 %v768_v37, %v768_v37  ;;  %v89_v47 = vmul.f32 %v770_v39, %v770_v39  ;;  %v90_v48 = vmul.f32 %v772_v40, %v772_v40 }
  0x15   :  { %121 = vadd.xlane.f32.xlu2 %v120_v22  ;;  %354 = vmatpush.xpose.msra.mxu0 %v740_v23  ;;  %v123_v38 = vadd.f32 %v87_v32, %v86_v31  ;;  %v66_v44 = vld [vmem:[#allocation2 + $0xb0] sm:$0xff]  ;;  %v67_v46 = vld [vmem:[#allocation2 + $0xb8] sm:$0xff]  ;;  %v91_v49 = vmul.f32 %v774_v41, %v774_v41  ;;  %v92_v50 = vmul.f32 %v60_v42, %v60_v42  ;;  %v64_v52 = vld [vmem:[#allocation2 + $0xa0] sm:$0xff] }
  0x16   :  { %517 = vmatpush.xpose.msra.mxu2 %v740_v23  ;;  %377 = vmatpush.xpose.msra.mxu1 %v748_v27  ;;  %v93_v51 = vmul.f32 %v61_v43, %v61_v43  ;;  %v65_v53 = vld [vmem:[#allocation2 + $0xa8] sm:$0xff]  ;;  %v126_v54 = vadd.f32 %v89_v47, %v88_v45  ;;  %v62_v57 = vld [vmem:[#allocation2 + $0x90] sm:$0xff]  ;;  %v63_v58 = vld [vmem:[#allocation2 + $0x98] sm:$0xff]  ;;  %v96_v59 = vmul.f32 %v64_v52, %v64_v52 }
  0x17   :  { %533 = vmatpush.xpose.msra.mxu3 %v748_v27  ;;  %v129_v55 = vadd.f32 %v91_v49, %v90_v48  ;;  %v94_v60 = vmul.f32 %v62_v57, %v62_v57  ;;  %v95_v61 = vmul.f32 %v63_v58, %v63_v58  ;;  %v97_v62 = vmul.f32 %v65_v53, %v65_v53 }
  0x18   :  { %v132_v56 = vadd.f32 %v93_v51, %v92_v50  ;;  %v98_v63 = vmul.f32 %v66_v44, %v66_v44  ;;  %v99_v5 = vmul.f32 %v67_v46, %v67_v46  ;;  %v100_v15 = vmul.f32 %v764_v33, %v764_v33 }
  0x19   :  { %355 = vmatpush.xpose.msra.mxu0 %v764_v33  ;;  %v135_v6 = vadd.f32 %v95_v61, %v94_v60  ;;  %v138_v11 = vadd.f32 %v97_v62, %v96_v59  ;;  %v101_v16 = vmul.f32 %v766_v34, %v766_v34  ;;  %v103_v18 = vmul.f32 %v748_v27, %v748_v27 }
  0x1a   :  { %518 = vmatpush.xpose.msra.mxu2 %v764_v33  ;;  %378 = vmatpush.xpose.msra.mxu1 %v766_v34  ;;  %v141_v12 = vadd.f32 %v99_v5, %v98_v63  ;;  %v104_v22 = vmul.f32 %v698_v2, %v698_v2  ;;  %v105_v24 = vmul.f32 %v716_v10, %v716_v10 }
  0x1b   :  { %534 = vmatpush.xpose.msra.mxu3 %v766_v34  ;;  %112 = vadd.xlane.f32.xlu0 %v111_v35  ;;  %v144_v23 = vadd.f32 %v101_v16, %v100_v15  ;;  %v147_v28 = vadd.f32 %v103_v18, %v102_v14  ;;  %v106_v2 = vmul.f32 %v692_v0, %v692_v0  ;;  %v348_v0 = vld [vmem:[#allocation5] sm:$0xff] }
  0x1c   :  { %118 = vadd.xlane.f32.xlu1 %v117_v36  ;;  %v150_v29 = vadd.f32 %v105_v24, %v104_v22  ;;  %v107_v10 = vmul.f32 %v694_v1, %v694_v1  ;;  %v350_v1 = vld [vmem:[#allocation5 + $0x10] sm:$0xf] }
  0x1d   :  { %124 = vadd.xlane.f32.xlu2 %v123_v38  ;;  %356 = vmatpush.xpose.msra.mxu0 %v66_v44 }
  0x1e   :  { %519 = vmatpush.xpose.msra.mxu2 %v66_v44  ;;  %379 = vmatpush.xpose.msra.mxu1 %v67_v46  ;;  %v153_v27 = vadd.f32 %v107_v10, %v106_v2 }
  0x1f   :  { %535 = vmatpush.xpose.msra.mxu3 %v67_v46 }
  0x21   :  { %357 = vmatpush.xpose.msra.mxu0 %v64_v52 }
  0x22   :  { %520 = vmatpush.xpose.msra.mxu2 %v64_v52  ;;  %380 = vmatpush.xpose.msra.mxu1 %v65_v53 }
  0x23   :  { %536 = vmatpush.xpose.msra.mxu3 %v65_v53  ;;  %127 = vadd.xlane.f32.xlu0 %v126_v54 }
  0x24   :  { %130 = vadd.xlane.f32.xlu1 %v129_v55 }
  0x25   :  { %133 = vadd.xlane.f32.xlu2 %v132_v56  ;;  %358 = vmatpush.xpose.msra.mxu0 %v62_v57 }
  0x26   :  { %521 = vmatpush.xpose.msra.mxu2 %v62_v57  ;;  %381 = vmatpush.xpose.msra.mxu1 %v63_v58 }
  0x27   :  { %537 = vmatpush.xpose.msra.mxu3 %v63_v58 }
  0x29   :  { %359 = vmatpush.xpose.msra.mxu0 %v60_v42 }
  0x2a   :  { %522 = vmatpush.xpose.msra.mxu2 %v60_v42  ;;  %382 = vmatpush.xpose.msra.mxu1 %v61_v43 }
  0x2b   :  { %538 = vmatpush.xpose.msra.mxu3 %v61_v43  ;;  %136 = vadd.xlane.f32.xlu0 %v135_v6 }
  0x2c   :  { %139 = vadd.xlane.f32.xlu1 %v138_v11 }
  0x2d   :  { %142 = vadd.xlane.f32.xlu2 %v141_v12  ;;  %360 = vmatpush.xpose.msra.mxu0 %v772_v40 }
  0x2e   :  { %523 = vmatpush.xpose.msra.mxu2 %v772_v40  ;;  %383 = vmatpush.xpose.msra.mxu1 %v774_v41 }
  0x2f   :  { %539 = vmatpush.xpose.msra.mxu3 %v774_v41 }
  0x31   :  { %361 = vmatpush.xpose.msra.mxu0 %v768_v37 }
  0x32   :  { %524 = vmatpush.xpose.msra.mxu2 %v768_v37  ;;  %384 = vmatpush.xpose.msra.mxu1 %v770_v39 }
  0x33   :  { %540 = vmatpush.xpose.msra.mxu3 %v770_v39  ;;  %145 = vadd.xlane.f32.xlu0 %v144_v23 }
  0x34   :  { %148 = vadd.xlane.f32.xlu1 %v147_v28 }
  0x35   :  { %151 = vadd.xlane.f32.xlu2 %v150_v29  ;;  %362 = vmatpush.xpose.msra.mxu0 %v744_v25 }
  0x36   :  { %525 = vmatpush.xpose.msra.mxu2 %v744_v25  ;;  %385 = vmatpush.xpose.msra.mxu1 %v746_v26 }
  0x37   :  { %541 = vmatpush.xpose.msra.mxu3 %v746_v26 }
  0x39   :  { %363 = vmatpush.xpose.msra.mxu0 %v714_v9 }
  0x3a   :  { %526 = vmatpush.xpose.msra.mxu2 %v714_v9  ;;  %386 = vmatpush.xpose.msra.mxu1 %v722_v13 }
  0x3b   :  { %542 = vmatpush.xpose.msra.mxu3 %v722_v13  ;;  %154 = vadd.xlane.f32.xlu0 %v153_v27 }
  0x3d   :  { %364 = vmatpush.xpose.msra.mxu0 %v734_v20 }
  0x3e   :  { %527 = vmatpush.xpose.msra.mxu2 %v734_v20  ;;  %387 = vmatpush.xpose.msra.mxu1 %v736_v21 }
  0x3f   :  { %543 = vmatpush.xpose.msra.mxu3 %v736_v21 }
  0x41   :  { %365 = vmatpush.xpose.msra.mxu0 %v710_v7 }
  0x42   :  { %528 = vmatpush.xpose.msra.mxu2 %v710_v7  ;;  %388 = vmatpush.xpose.msra.mxu1 %v712_v8  ;;  %v349_v7 = vld [vmem:[#allocation5 + $0x8] sm:$0xff] }
  0x43   :  { %544 = vmatpush.xpose.msra.mxu3 %v712_v8  ;;  %v351_v8 = vld [vmem:[#allocation5 + $0x18] sm:$0xf] }
  0x45   :  { %366 = vmatpush.xpose.msra.mxu0 %v728_v17 }
  0x46   :  { %529 = vmatpush.xpose.msra.mxu2 %v728_v17  ;;  %389 = vmatpush.xpose.msra.mxu1 %v732_v19 }
  0x47   :  { %545 = vmatpush.xpose.msra.mxu3 %v732_v19 }
  0x49   :  { %367 = vmatpush.xpose.msra.mxu0 %v700_v3 }
  0x4a   :  { %530 = vmatpush.xpose.msra.mxu2 %v700_v3  ;;  %390 = vmatpush.xpose.msra.mxu1 %v702_v4  ;;  %v414_v3 = vlaneseq }
  0x4b   :  { %546 = vmatpush.xpose.msra.mxu3 %v702_v4 }
  0x4c   :  { %368 = vmatmul.f32.vlgmr.msra.gmra.mxu0 %v348_v0  ;;  %v858_v38 = vand.u32 127, %v414_v3 }
  0x4d   :  { %371 = vmatmul.f32.vlgmr.msra.gmra.mxu2 %v350_v1  ;;  %391 = vmatmul.f32.vlgmr.msra.gmra.mxu1 %v349_v7 }
  0x4e   :  { %394 = vmatmul.f32.vlgmr.msra.gmra.mxu3 %v351_v8  ;;  %v868_v46 = vadd.s32 4294967280, %v858_v38  ;;  %v871_v47 = vadd.s32 4294967264, %v858_v38  ;;  %v874_v48 = vadd.s32 4294967288, %v858_v38  ;;  %v879_v54 = vadd.s32 4294967272, %v858_v38 }
  0x4f   :  { %v889_v58 = vadd.s32 4294967256, %v858_v38 }
  0x86   :  { %v110_v9 = vpop.xlane.xlu0 %109 }
  0x87   :  { %v116_v13 = vpop.xlane.xlu1 %115  ;;  %v836_v17 = vmax.f32 %v110_v9, 1e-24 }
  0x88   :  { %v158_v19 = vmax.f32 %v116_v13, 1e-24  ;;  %v122_v20 = vpop.xlane.xlu2 %121 }
  0x89   :  { %v838_v21 = vmax.f32 %v122_v20, 1e-24  ;;  %554 = vrsqrt.f32 %v836_v17  ;;  %vm178_vm0 = vweird.f32 %v836_v17 }
  0x8a   :  { %556 = vrsqrt.f32 %v158_v19  ;;  %vm198_vm1 = vweird.f32 %v158_v19 }
  0x8b   :  { %558 = vrsqrt.f32 %v838_v21  ;;  %vm218_vm4 = vweird.f32 %v838_v21 }
  0x8e   :  { %v113_v4 = vpop.xlane.xlu0 %112 }
  0x8f   :  { %v119_v25 = vpop.xlane.xlu1 %118  ;;  %v842_v26 = vpop.eup %554  ;;  %v844_v30 = vmax.f32 %v113_v4, 1e-24 }
  0x90   :  { %v846_v31 = vmax.f32 %v119_v25, 1e-24  ;;  %v125_v32 = vpop.xlane.xlu2 %124  ;;  %v848_v33 = vpop.eup %556  ;;  %v173_v34 = vmul.f32 %v842_v26, %v836_v17  ;;  %vm179_vm2 = vweird.f32 %v842_v26 }
  0x91   :  { %v852_v35 = vmax.f32 %v125_v32, 1e-24  ;;  %v854_v36 = vpop.eup %558  ;;  %v193_v37 = vmul.f32 %v848_v33, %v158_v19  ;;  %560 = vrsqrt.f32 %v844_v30  ;;  %vm199_vm3 = vweird.f32 %v848_v33  ;;  %vm919_vm8 = vmor %vm178_vm0, %vm179_vm2 }
  0x92   :  { %v174_v39 = vmul.f32 %v842_v26, %v173_v34  ;;  %v213_v40 = vmul.f32 %v854_v36, %v838_v21  ;;  %562 = vrsqrt.f32 %v846_v31  ;;  %vm908_vm5 = vmor %vm198_vm1, %vm199_vm3  ;;  %vm219_vm6 = vweird.f32 %v854_v36 }
  0x93   :  { %v194_v41 = vmul.f32 %v848_v33, %v193_v37  ;;  %564 = vrsqrt.f32 %v852_v35  ;;  %vm188_vm7 = vweird.f32 %v844_v30  ;;  %vm208_vm10 = vweird.f32 %v846_v31  ;;  %vm940_vm13 = vmor %vm218_vm4, %vm219_vm6 }
  0x94   :  { %v175_v42 = vmul.f32 0.5, %v174_v39  ;;  %v214_v43 = vmul.f32 %v854_v36, %v213_v40  ;;  %vm228_vm15 = vweird.f32 %v852_v35  ;;  %vm423_vm0 = vcmask 195712  }
  0x95   :  { %v195_v44 = vmul.f32 0.5, %v194_v41  ;;  %vm427_vm3 = vcmask 261312   ;;  %vm431_vm6 = vcmask 326912  }
  0x96   :  { %v176_v45 = vsub.f32 1.5, %v175_v42  ;;  %v128_v49 = vpop.xlane.xlu0 %127  ;;  %v215_v53 = vmul.f32 0.5, %v214_v43 }
  0x97   :  { %v131_v50 = vpop.xlane.xlu1 %130  ;;  %v876_v51 = vpop.eup %560  ;;  %v196_v52 = vsub.f32 1.5, %v195_v44  ;;  %v881_v55 = vmax.f32 %v128_v49, 1e-24 }
  0x98   :  { %v883_v56 = vpop.eup %562  ;;  %v183_v57 = vmul.f32 %v876_v51, %v844_v30  ;;  %v177_v61 = vmul.f32 %v842_v26, %v176_v45  ;;  %v902_v5 = vmax.f32 %v131_v50, 1e-24  ;;  %v216_v11 = vsub.f32 1.5, %v215_v53  ;;  %v134_v14 = vpop.xlane.xlu2 %133 }
  0x99   :  { %v891_v59 = vpop.eup %564  ;;  %v203_v60 = vmul.f32 %v883_v56, %v846_v31  ;;  %566 = vrsqrt.f32 %v881_v55  ;;  %v197_v6 = vmul.f32 %v848_v33, %v196_v52  ;;  %vm189_vm9 = vweird.f32 %v876_v51 }
  0x9a   :  { %v184_v62 = vmul.f32 %v876_v51, %v183_v57  ;;  %v223_v63 = vmul.f32 %v891_v59, %v852_v35  ;;  %vm209_vm11 = vweird.f32 %v883_v56  ;;  %v181_v23 = vsel %vm919_vm8, %v842_v26, %v177_v61  ;;  %vm951_vm14 = vmor %vm188_vm7, %vm189_vm9 }
  0x9b   :  { %v204_v12 = vmul.f32 %v883_v56, %v203_v60  ;;  %568 = vrsqrt.f32 %v902_v5  ;;  %v201_v27 = vsel %vm908_vm5, %v848_v33, %v197_v6  ;;  %v217_v0 = vmul.f32 %v854_v36, %v216_v11  ;;  %vm963_vm1 = vmor %vm208_vm10, %vm209_vm11 }
  0x9c   :  { %v185_v16 = vmul.f32 0.5, %v184_v62  ;;  %v224_v18 = vmul.f32 %v891_v59, %v223_v63  ;;  %v944_v8 = vmax.f32 %v134_v14, 1e-24  ;;  %v332_v21 = vmul.f32 20.0, %v181_v23 }
  0x9d   :  { %v205_v24 = vmul.f32 0.5, %v204_v12  ;;  %vm229_vm2 = vweird.f32 %v891_v59  ;;  %v334_v25 = vmul.f32 20.0, %v201_v27  ;;  %v221_v31 = vsel %vm940_vm13, %v854_v36, %v217_v0 }
  0x9e   :  { %v186_v28 = vsub.f32 1.5, %v185_v16  ;;  %v225_v29 = vmul.f32 0.5, %v224_v18  ;;  %v137_v2 = vpop.xlane.xlu0 %136  ;;  %570 = vrsqrt.f32 %v944_v8  ;;  %vm988_vm4 = vmor %vm228_vm15, %vm229_vm2  ;;  %v993_v36 = vadd.s32 4294967248, %v858_v38 }
  0x9f   :  { %v930_v10 = vpop.eup %566  ;;  %v206_v7 = vsub.f32 1.5, %v205_v24  ;;  %v140_v20 = vpop.xlane.xlu1 %139  ;;  %v973_v32 = vmax.f32 %v137_v2, 1e-24  ;;  %v416_v43 = vperm.slane %v332_v21, %v858_v38  ;;  %v999_v45 = vadd.s32 4294967240, %v858_v38 }
  0xa0   :  { %v187_v9 = vmul.f32 %v876_v51, %v186_v28  ;;  %v226_v17 = vsub.f32 1.5, %v225_v29  ;;  %v233_v19 = vmul.f32 %v930_v10, %v881_v55  ;;  %v979_v37 = vmax.f32 %v140_v20, 1e-24  ;;  %v143_v49 = vpop.xlane.xlu2 %142 }
  0xa1   :  { %v207_v3 = vmul.f32 %v883_v56, %v206_v7  ;;  %v981_v39 = vpop.eup %568  ;;  %572 = vrsqrt.f32 %v973_v32  ;;  %v1003_v50 = vmul.f32 20.0, %v221_v31  ;;  %vm238_vm5 = vweird.f32 %v881_v55 }
  0xa2   :  { %v191_v26 = vsel %vm951_vm14, %v876_v51, %v187_v9  ;;  %v234_v30 = vmul.f32 %v930_v10, %v233_v19  ;;  %v227_v34 = vmul.f32 %v891_v59, %v226_v17  ;;  %v243_v35 = vmul.f32 %v981_v39, %v902_v5 }
  0xa3   :  { %v333_v33 = vmul.f32 20.0, %v191_v26  ;;  %v211_v40 = vsel %vm963_vm1, %v883_v56, %v207_v3  ;;  %574 = vrsqrt.f32 %v979_v37  ;;  %v422_v53 = vperm.slane %v334_v25, %v868_v46 }
  0xa4   :  { %v235_v42 = vmul.f32 0.5, %v234_v30  ;;  %v1007_v52 = vpop.eup %570  ;;  %v335_v56 = vmul.f32 20.0, %v211_v40  ;;  %v244_v57 = vmul.f32 %v981_v39, %v243_v35  ;;  %vm239_vm7 = vweird.f32 %v930_v10 }
  0xa5   :  { %v418_v44 = vperm.slane %v333_v33, %v874_v48  ;;  %v231_v48 = vsel %vm988_vm4, %v891_v59, %v227_v34  ;;  %vm248_vm8 = vweird.f32 %v902_v5  ;;  %vm249_vm9 = vweird.f32 %v981_v39 }
  0xa6   :  { %v236_v51 = vsub.f32 1.5, %v235_v42  ;;  %v146_v60 = vpop.xlane.xlu0 %145  ;;  %v253_v61 = vmul.f32 %v1007_v52, %v944_v8  ;;  %v245_v63 = vmul.f32 0.5, %v244_v57  ;;  %v1021_v6 = vmax.f32 %v143_v49, 1e-24  ;;  %vm1048_vm14 = vmor %vm248_vm8, %vm249_vm9 }
  0xa7   :  { %v420_v46 = vsel %vm419_vm12, %v418_v44, %v416_v43  ;;  %v1023_v59 = vpop.eup %572  ;;  %v430_v11 = vperm.slane %v1003_v50, %v871_v47  ;;  %vm435_vm10 = vcmask 392512   ;;  %v337_v12 = vmul.f32 20.0, %v231_v48  ;;  %vm1034_vm12 = vmor %vm238_vm5, %vm239_vm7  ;;  %v149_v1 = vpop.xlane.xlu1 %148 }
  0xa8   :  { %v237_v62 = vmul.f32 %v930_v10, %v236_v51  ;;  %v254_v14 = vmul.f32 %v1007_v52, %v253_v61  ;;  %vm258_vm11 = vweird.f32 %v944_v8  ;;  %v426_v15 = vperm.slane %v335_v56, %v879_v54  ;;  %v152_v17 = vpop.xlane.xlu2 %151 }
  0xa9   :  { %v246_v18 = vsub.f32 1.5, %v245_v63  ;;  %v263_v47 = vmul.f32 %v1023_v59, %v973_v32  ;;  %vm268_vm13 = vweird.f32 %v973_v32  ;;  %v1041_v22 = vpop.eup %574  ;;  %v424_v24 = vsel %vm423_vm0, %v422_v53, %v420_v46 }
  0xaa   :  { %v255_v55 = vmul.f32 0.5, %v254_v14  ;;  %vm259_vm15 = vweird.f32 %v1007_v52  ;;  %576 = vrsqrt.f32 %v1021_v6  ;;  %vm439_vm1 = vcmask 458112  }
  0xab   :  { %v241_v23 = vsel %vm1034_vm12, %v930_v10, %v237_v62  ;;  %v247_v28 = vmul.f32 %v981_v39, %v246_v18  ;;  %v264_v29 = vmul.f32 %v1023_v59, %v263_v47  ;;  %v273_v5 = vmul.f32 %v1041_v22, %v979_v37  ;;  %vm1075_vm4 = vmor %vm258_vm11, %vm259_vm15 }
  0xac   :  { %v434_v2 = vperm.slane %v337_v12, %v889_v58  ;;  %v256_v27 = vsub.f32 1.5, %v255_v55  ;;  %vm278_vm0 = vweird.f32 %v979_v37  ;;  %v1063_v0 = vmax.f32 %v146_v60, 1e-24 }
  0xad   :  { %v428_v7 = vsel %vm427_vm3, %v426_v15, %v424_v24  ;;  %v251_v10 = vsel %vm1048_vm14, %v981_v39, %v247_v28  ;;  %v265_v9 = vmul.f32 0.5, %v264_v29  ;;  %v274_v13 = vmul.f32 %v1041_v22, %v273_v5 }
  0xae   :  { %v338_v19 = vmul.f32 20.0, %v241_v23  ;;  %vm443_vm2 = vcmask 523712   ;;  %v257_v58 = vmul.f32 %v1007_v52, %v256_v27  ;;  %vm269_vm3 = vweird.f32 %v1023_v59  ;;  %v155_v25 = vpop.xlane.xlu0 %154 }
  0xaf   :  { %578 = vrsqrt.f32 %v1063_v0  ;;  %v266_v21 = vsub.f32 1.5, %v265_v9  ;;  %v275_v3 = vmul.f32 0.5, %v274_v13  ;;  %vm279_vm5 = vweird.f32 %v1041_v22  ;;  %vm1094_vm7 = vmor %vm268_vm13, %vm269_vm3 }
  0xb0   :  { %v1082_v4 = vmax.f32 %v149_v1, 1e-24  ;;  %v577_v26 = vpop.eup %576  ;;  %v432_v30 = vsel %vm431_vm6, %v430_v11, %v428_v7  ;;  %v339_v31 = vmul.f32 20.0, %v251_v10  ;;  %v445_v8 = vadd.s32 4294967232, %v858_v38  ;;  %vm1104_vm8 = vmor %vm278_vm0, %vm279_vm5 }
  0xb1   :  { %v1086_v33 = vmax.f32 %v152_v17, 1e-24  ;;  %v261_v34 = vsel %vm1075_vm4, %v1007_v52, %v257_v58  ;;  %v267_v39 = vmul.f32 %v1023_v59, %v266_v21  ;;  %v276_v41 = vsub.f32 1.5, %v275_v3 }
  0xb2   :  { %v283_v42 = vmul.f32 %v577_v26, %v1021_v6  ;;  %v438_v43 = vperm.slane %v338_v19, %v993_v36  ;;  %vm447_vm6 = vcmask 589312   ;;  %580 = vrsqrt.f32 %v1082_v4 }
  0xb3   :  { %v1109_v32 = vmax.f32 %v155_v25, 1e-24  ;;  %v436_v35 = vsel %vm435_vm10, %v434_v2, %v432_v30  ;;  %v271_v49 = vsel %vm1094_vm7, %v1023_v59, %v267_v39  ;;  %v277_v36 = vmul.f32 %v1041_v22, %v276_v41 }
  0xb4   :  { %v284_v50 = vmul.f32 %v577_v26, %v283_v42  ;;  %v442_v37 = vperm.slane %v339_v31, %v999_v45  ;;  %v340_v52 = vmul.f32 20.0, %v261_v34  ;;  %vm288_vm9 = vweird.f32 %v1021_v6 }
  0xb5   :  { %v579_v51 = vpop.eup %578  ;;  %582 = vrsqrt.f32 %v1086_v33  ;;  %v281_v53 = vsel %vm1104_vm8, %v1041_v22, %v277_v36  ;;  %vm289_vm10 = vweird.f32 %v577_v26  ;;  %v440_v57 = vsel %vm439_vm1, %v438_v43, %v436_v35 }
  0xb6   :  { %v285_v56 = vmul.f32 0.5, %v284_v50  ;;  %v293_v48 = vmul.f32 %v579_v51, %v1063_v0  ;;  %v449_v60 = vadd.s32 4294967224, %v858_v38  ;;  %v341_v61 = vmul.f32 20.0, %v271_v49  ;;  %vm1130_vm12 = vmor %vm288_vm9, %vm289_vm10 }
  0xb7   :  { %584 = vrsqrt.f32 %v1109_v32  ;;  %vm451_vm11 = vcmask 654912   ;;  %v453_v45 = vadd.s32 4294967216, %v858_v38  ;;  %v446_v59 = vperm.slane %v340_v52, %v445_v8 }
  0xb8   :  { %v286_v46 = vsub.f32 1.5, %v285_v56  ;;  %v294_v62 = vmul.f32 %v579_v51, %v293_v48  ;;  %v581_v63 = vpop.eup %580  ;;  %v342_v11 = vmul.f32 20.0, %v281_v53  ;;  %v457_v12 = vadd.s32 4294967208, %v858_v38 }
  0xb9   :  { %v461_v15 = vadd.s32 4294967200, %v858_v38  ;;  %v444_v16 = vsel %vm443_vm2, %v442_v37, %v440_v57  ;;  %v303_v22 = vmul.f32 %v581_v63, %v1082_v4  ;;  %v450_v54 = vperm.slane %v341_v61, %v449_v60 }
  0xba   :  { %v287_v18 = vmul.f32 %v577_v26, %v286_v46  ;;  %v295_v47 = vmul.f32 0.5, %v294_v62  ;;  %vm298_vm13 = vweird.f32 %v1063_v0  ;;  %vm299_vm14 = vweird.f32 %v579_v51 }
  0xbb   :  { %v583_v24 = vpop.eup %582  ;;  %vm308_vm15 = vweird.f32 %v1082_v4  ;;  %v304_v23 = vmul.f32 %v581_v63, %v303_v22  ;;  %v448_v5 = vsel %vm447_vm6, %v446_v59, %v444_v16  ;;  %v454_v2 = vperm.slane %v342_v11, %v453_v45  ;;  %vm300_vm0 = vmor %vm298_vm13, %vm299_vm14 }
  0xbc   :  { %v291_v6 = vsel %vm1130_vm12, %v577_v26, %v287_v18  ;;  %v296_v55 = vsub.f32 1.5, %v295_v47  ;;  %v313_v28 = vmul.f32 %v583_v24, %v1086_v33  ;;  %vm309_vm1 = vweird.f32 %v581_v63 }
  0xbd   :  { %v585_v29 = vpop.eup %584  ;;  %v343_v27 = vmul.f32 20.0, %v291_v6  ;;  %v305_v7 = vmul.f32 0.5, %v304_v23  ;;  %v452_v13 = vsel %vm451_vm11, %v450_v54, %v448_v5  ;;  %vm318_vm2 = vweird.f32 %v1086_v33  ;;  %vm310_vm5 = vmor %vm308_vm15, %vm309_vm1 }
  0xbe   :  { %v297_v1 = vmul.f32 %v579_v51, %v296_v55  ;;  %v314_v10 = vmul.f32 %v583_v24, %v313_v28  ;;  %v323_v9 = vmul.f32 %v585_v29, %v1109_v32  ;;  %vm319_vm4 = vweird.f32 %v583_v24 }
  0xbf   :  { %vm455_vm3 = vcmask 720512   ;;  %v306_v19 = vsub.f32 1.5, %v305_v7  ;;  %v458_v21 = vperm.slane %v343_v27, %v457_v12  ;;  %vm459_vm7 = vcmask 786112   ;;  %vm320_vm6 = vmor %vm318_vm2, %vm319_vm4 }
  0xc0   :  { %v301_v17 = vsel %vm300_vm0, %v579_v51, %v297_v1  ;;  %v315_v58 = vmul.f32 0.5, %v314_v10  ;;  %v324_v20 = vmul.f32 %v585_v29, %v323_v9  ;;  %v456_v0 = vsel %vm455_vm3, %v454_v2, %v452_v13 }
  0xc1   :  { %v344_v3 = vmul.f32 20.0, %v301_v17  ;;  %v307_v25 = vmul.f32 %v581_v63, %v306_v19  ;;  %v465_v8 = vadd.s32 4294967192, %v858_v38  ;;  %vm328_vm8 = vweird.f32 %v1109_v32 }
  0xc2   :  { %v316_v26 = vsub.f32 1.5, %v315_v58  ;;  %v325_v30 = vmul.f32 0.5, %v324_v20  ;;  %vm463_vm9 = vcmask 851712   ;;  %vm329_vm10 = vweird.f32 %v585_v29 }
  0xc3   :  { %v462_v31 = vperm.slane %v344_v3, %v461_v15  ;;  %v311_v34 = vsel %vm310_vm5, %v581_v63, %v307_v25  ;;  %v469_v41 = vadd.s32 4294967184, %v858_v38  ;;  %v460_v42 = vsel %vm459_vm7, %v458_v21, %v456_v0  ;;  %vm330_vm12 = vmor %vm328_vm8, %vm329_vm10 }
  0xc4   :  { %v317_v39 = vmul.f32 %v583_v24, %v316_v26  ;;  %v326_v40 = vsub.f32 1.5, %v325_v30  ;;  %v345_v4 = vmul.f32 20.0, %v311_v34  ;;  %vm467_vm11 = vcmask 917312  }
  0xc5   :  { %v464_v35 = vsel %vm463_vm9, %v462_v31, %v460_v42  ;;  %v473_v33 = vadd.s32 4294967176, %v858_v38  ;;  %vm471_vm13 = vcmask 982912   ;;  %vm475_vm14 = vcmask 1048512  }
  0xc6   :  { %v321_v43 = vsel %vm320_vm6, %v583_v24, %v317_v39  ;;  %v327_v44 = vmul.f32 %v585_v29, %v326_v40  ;;  %v466_v49 = vperm.slane %v345_v4, %v465_v8 }
  0xc7   :  { %v346_v36 = vmul.f32 20.0, %v321_v43 }
  0xc8   :  { %v331_v50 = vsel %vm330_vm12, %v585_v29, %v327_v44  ;;  %v468_v56 = vsel %vm467_vm11, %v466_v49, %v464_v35 }
  0xc9   :  { %v369_v51 = vpop.f32.mrf.mxu0  ;;  %v470_v37 = vperm.slane %v346_v36, %v469_v41  ;;  %v347_v52 = vmul.f32 20.0, %v331_v50 }
  0xca   :  { %v392_v53 = vpop.f32.mrf.mxu1 }
  0xcb   :  { %v393_v48 = vadd.f32 %v392_v53, %v369_v51  ;;  %v474_v57 = vperm.slane %v347_v52, %v473_v33  ;;  %v472_v60 = vsel %vm471_vm13, %v470_v37, %v468_v56 }
  0xcd   :  { %v476_v61 = vsel %vm475_vm14, %v474_v57, %v472_v60 }
  0xce   :  { %v491_v45 = vmul.f32 %v476_v61, %v393_v48 }
  0xd0   :  { %v372_v46 = vpop.f32.mrf.mxu2  ;;  %493 = vst [vmem:[#allocation7] sm:$0xff] %v491_v45 }
  0xd1   :  { %v395_v38 = vpop.f32.mrf.mxu3 }
  0xd2   :  { %v396_v32 = vadd.f32 %v395_v38, %v372_v46 }
  0xd4   :  { %v492_v62 = vmul.f32 %v476_v61, %v396_v32 }
  0xd6   :  { %494 = vst [vmem:[#allocation7 + $0x8] sm:$0xf] %v492_v62 }
  0xd7   :  { %507 = dma.vmem_to_hbm [thread:$0]  %s500_s1, 256, %s502_s23, [#allocation4], %s669_s24, %s669_s24, %s670_s25  }
  0xd8   :  { %662 = dma.done.wait [#allocation4], 256  }
  0xd9   :  { %663 = vsyncadd [#allocation4], 4294967040 }
  0xda   :  { %512 = vsyncpa [#allocation3], 1 }
  0xdb   :  { %513 = vsyncpa [#allocation6], 1 }
  0xdc   :  { %514 = vsyncpa [#allocation4], 1 }

</bundles_post_ra>
